<compile_context>
chip_gen: v6e
topology: v6e:2x2x1
jax: 0.10.0
libtpu: 0.0.40
codegen_flags: <defaults>
</compile_context>

<pallas_src>
import math

import jax
import jax.numpy as jnp
from jax.experimental import pallas as pl
from jax.experimental.pallas import tpu as pltpu


def _copy_kernel(x_ref, o_ref):
    # Identical in/out block shapes: pure identity copy, no relayout.
    o_ref[...] = x_ref[...]


def _choose_2d_view(n: int, itemsize: int):
    """Pick (rows, cols, rows_per_block) for a lane/sublane-dense tiled copy.

    cols is a multiple of 128 (lane-dense), rows a multiple of 8
    (sublane-dense); each block is capped at ~4 MiB so double-buffered
    input + output fits comfortably under the default scoped VMEM limit on
    v5e / v6e / v7x.
    """
    for cols in (2048, 1024, 512, 256, 128):
        if n % (cols * 8) == 0:
            rows = n // cols
            max_rows = max(8, (4 << 20) // (cols * itemsize))
            rows_per_block = rows
            if rows_per_block > max_rows:
                # Largest multiple-of-8 divisor of `rows` that fits the cap.
                rows_per_block = 8
                for d in range(8, (max_rows // 8) * 8 + 1, 8):
                    if rows % d == 0:
                        rows_per_block = d
            return rows, cols, rows_per_block
    # Fallback for awkward sizes: a single full-array block.  Block shape equal
    # to the full array dims is always legal (at the cost of one unpipelined
    # step with masked stores).
    return 1, n, 1


def flatten(x: jax.Array) -> jax.Array:
    """Equivalent of torch `input.view(1, -1)`."""
    n = math.prod(x.shape)
    itemsize = jnp.dtype(x.dtype).itemsize
    rows, cols, rows_per_block = _choose_2d_view(n, itemsize)

    # Metadata-only reshape in the wrapper (free); the kernel sees a dense
    # 2-D (rows, cols) view.
    x2 = x.reshape(rows, cols)
    grid = (rows // rows_per_block,)

    y2 = pl.pallas_call(
        _copy_kernel,
        out_shape=jax.ShapeDtypeStruct((rows, cols), x.dtype),
        grid_spec=pltpu.PrefetchScalarGridSpec(
            num_scalar_prefetch=0,
            grid=grid,
            in_specs=[
                pl.BlockSpec((rows_per_block, cols), lambda i: (i, 0)),
            ],
            out_specs=pl.BlockSpec((rows_per_block, cols), lambda i: (i, 0)),
        ),
        compiler_params=pltpu.CompilerParams(
            # Single independent axis: lets v7x shard the copy across both
            # TensorCores; neutral on single-TC chips.
            dimension_semantics=("parallel",),
        ),
    )(x2)

    # Metadata-only reshape to the torch view(1, -1) result shape.
    return y2.reshape(1, n)


if __name__ == "__main__":
    key = jax.random.PRNGKey(0)
    B, C, H, W = 2, 4, 16, 16
    x = jax.random.normal(key, (B, C, H, W), dtype=jnp.float32)

    y = flatten(x)
    jax.block_until_ready(y)

    # Reference: plain row-major flatten (same as torch view(1, -1))
    ref = x.reshape(1, -1)
    assert y.shape == (1, B * C * H * W), y.shape
    assert y.dtype == x.dtype
    assert jnp.array_equal(y, ref), "flatten mismatch"

    print("KERNEL_OK")
</pallas_src>

<mosaic_0001>
module attributes {stable_mosaic.version = 11 : i64} {
  func.func @_copy_kernel(%arg0: i32, %arg1: memref<8x256xf32, #tpu.memory_space<vmem>>, %arg2: memref<8x256xf32, #tpu.memory_space<vmem>>) attributes {dimension_semantics = [#tpu.dimension_semantics<parallel>], iteration_bounds = array<i64: 1>, scalar_prefetch = 0 : i64, scratch_operands = 0 : i64, tpu.core_type = #tpu.core_type<tc>, window_params = [{transform_indices = @transform_0, window_bounds = array<i64: 8, 256>}, {transform_indices = @transform_1, window_bounds = array<i64: 8, 256>}]} {
    %c0 = arith.constant 0 : index
    %c0_0 = arith.constant 0 : index
    %0 = vector.load %arg1[%c0, %c0_0] : memref<8x256xf32, #tpu.memory_space<vmem>>, vector<8x256xf32>
    %c0_1 = arith.constant 0 : index
    %c0_2 = arith.constant 0 : index
    %1 = vector.load %arg2[%c0_1, %c0_2] : memref<8x256xf32, #tpu.memory_space<vmem>>, vector<8x256xf32>
    tpu.vector_store %arg2[%c0_1, %c0_2], %0 {strides = array<i32>} : memref<8x256xf32, #tpu.memory_space<vmem>>, vector<8x256xf32>,
    return
  }
  func.func @transform_0(%arg0: i32) -> (i32, i32) {
    %c0_i32 = arith.constant 0 : i32
    %c0_i32_0 = arith.constant 0 : i32
    return %arg0, %c0_i32 : i32, i32
  }
  func.func @transform_1(%arg0: i32) -> (i32, i32) {
    %c0_i32 = arith.constant 0 : i32
    %c0_i32_0 = arith.constant 0 : i32
    return %arg0, %c0_i32 : i32, i32
  }
}

</mosaic_0001>

<bundles_post_ra>
// kernel: tpu_custom_call.1
= control target key start
LH: loop header
LB: loop body
LE: loop exit
PB: predicated region body
PF: predicated region fallthrough
CT: control target
= control target key end

     0   :  { %6 = vsyncpa [#allocation3], 0  ;;  %s104_s0 = inlined_call_operand.hbm [shape: f32[8,256], index: 0, kind: input, shape index: {}]   ;;  %s105_s1 = inlined_call_operand.hbm [shape: f32[8,256], index: 1, kind: output, shape index: {}]  }
   0x1   :  { %7 = vsyncpa [#allocation4], 0  ;;  %s86_s6 = smov [#allocation2]  }
   0x2   :  { %s14_s7 = sshll.u32 %s86_s6, 4  ;;  %s15_s7 = int_to_ptr.vmem [resolvable:$true] %s14_s7 }
   0x3   :  { %s50_s8 = scalar_lea.vmem %s15_s7, 256  ;;  %p55_p1 = scmp.lt.s32.totalorder %s15_s7, %s15_s7 }
   0x4   :  { %p51_p0 = scmp.ne.s32.totalorder %s15_s7, %s50_s8  ;;  %p56_p2 = scmp.lt.s32.totalorder %s50_s8, %s50_s8 }
   0x6   :  { %p57_p3 = por %p56_p2, %p55_p1 }
   0x8   :  { %p58_p4 = pnand %p57_p3, %p51_p0 }
   0xa   :  { %61 = shalt.err (!%p58_p4)
}
   0xb   :  { %17 = dma.hbm_to_vmem [thread:$0]  %s104_s0, 256, %s15_s7, [#allocation3]  }
   0xc   :  { %82 = dma.done.wait [#allocation3], 256  }
   0xd   :  { %83 = vsyncadd [#allocation3], 4294967040  ;;  %s87_s11 = smov [#allocation5]   ;;  %v21_v0 = vld [vmem:[#allocation2] sm:$0xff]  ;;  %v22_v1 = vld [vmem:[#allocation2 + $0x8] sm:$0xff] }
   0xe   :  { %s31_s12 = sshll.u32 %s87_s11, 4  ;;  %23 = vst [vmem:[#allocation5] sm:$0xff] %v21_v0  ;;  %24 = vst [vmem:[#allocation5 + $0x8] sm:$0xff] %v22_v1  ;;  %s32_s12 = int_to_ptr.vmem [resolvable:$true] %s31_s12 }
   0xf   :  { %s62_s13 = scalar_lea.vmem %s32_s12, 256  ;;  %p67_p6 = scmp.lt.s32.totalorder %s32_s12, %s32_s12 }
  0x10   :  { %p63_p5 = scmp.ne.s32.totalorder %s32_s12, %s62_s13  ;;  %p68_p7 = scmp.lt.s32.totalorder %s62_s13, %s62_s13 }
  0x12   :  { %p69_p8 = por %p68_p7, %p67_p6 }
  0x14   :  { %p70_p9 = pnand %p69_p8, %p63_p5 }
  0x16   :  { %73 = shalt.err (!%p70_p9)
}
  0x17   :  { %34 = dma.vmem_to_hbm [thread:$0]  %s32_s12, 256, %s105_s1, [#allocation4]  }
  0x18   :  { %84 = dma.done.wait [#allocation4], 256  }
  0x19   :  { %85 = vsyncadd [#allocation4], 4294967040 }
  0x1a   :  { %38 = vsyncpa [#allocation3], 1 }
  0x1b   :  { %39 = vsyncpa [#allocation4], 1 }

</bundles_post_ra>
